<compile_context>
chip_gen: v7x
topology: tpu7x:2x2x1
jax: 0.10.0
libtpu: 0.0.40
codegen_flags: <defaults>
</compile_context>

<pallas_src>
import jax
import jax.numpy as jnp
from jax.experimental import pallas as pl
from jax.experimental.pallas import tpu as pltpu

SELU_ALPHA = 1.6732632423543772
SELU_SCALE = 1.0507009873554805

IN_F = 64
HID_F = 120
OUT_F = 10
HID_PAD = 128   # hidden 120 -> 128 (lane aligned)
OUT_PAD = 16    # output 10  -> 16  (narrow output slab: 8x fewer HBM write bytes than 128)


def _selu(x):
    # F.selu: scale * (max(0, x) + min(0, alpha * (exp(x) - 1))) -- dtype-preserving.
    return SELU_SCALE * jnp.where(x > 0, x, SELU_ALPHA * (jnp.exp(x) - 1.0))


def _round_up(a, m):
    return ((a + m - 1) // m) * m


def mlp_share_kernel(x_ref, w1_ref, b1_ref, w2_ref, b2_ref, o_ref):
    # x_ref : (TILE_N, 64)   native dtype (f32 here)
    # w1_ref: (64, 128)      bf16     b1_ref: (1, 128) f32
    # w2_ref: (128, 16)      bf16     b2_ref: (1, 16)  f32
    # o_ref : (TILE_N, 16)   f32
    x = x_ref[...].astype(jnp.bfloat16)                 # cast in VMEM (hides under DMA)
    h = jnp.dot(x, w1_ref[...], preferred_element_type=jnp.float32) + b1_ref[...]
    h = _selu(h.astype(jnp.bfloat16))                   # bf16 epilogue; feeds bf16 matmul directly
    y = jnp.dot(h, w2_ref[...], preferred_element_type=jnp.float32) + b2_ref[...]
    o_ref[...] = _selu(y)                               # final SELU in f32; dropout (eval) == identity


def mlp_share_forward(x, w1, b1, w2, b2, *, tile_n=4096):
    """Pallas implementation of MLP_share.forward (eval mode).

    x : any shape with total elements divisible by 64 (like torch's view(-1, 64)).
    w1: (64, 120), b1: (120,), w2: (120, 10), b2: (10,)
    Returns (N, 10) float32 where N = x.size // 64.
    """
    x2d = x.reshape(-1, IN_F)
    n = x2d.shape[0]

    # --- Row tiling: pad rows only to a multiple of 8, pick a tile that divides the
    # padded extent, and force >= 2 grid steps when possible (v7x megacore split). ---
    n8 = _round_up(n, 8)
    num_tiles = max(1, -(-n8 // tile_n))                # cdiv
    if num_tiles == 1 and n8 >= 16:
        num_tiles = 2
    tile = _round_up(-(-n8 // num_tiles), 8)
    n_pad = tile * num_tiles
    if n_pad != n:
        x2d = jnp.pad(x2d, ((0, n_pad - n), (0, 0)))    # only pays when padding is nonzero

    # Pad weights/biases once: hidden 120->128, out 10->16 (zero padding is exact: SELU(0)=0).
    w1p = jnp.zeros((IN_F, HID_PAD), jnp.float32).at[:, :HID_F].set(
        w1.astype(jnp.float32)).astype(jnp.bfloat16)
    b1p = jnp.zeros((1, HID_PAD), jnp.float32).at[0, :HID_F].set(b1.astype(jnp.float32))
    w2p = jnp.zeros((HID_PAD, OUT_PAD), jnp.float32).at[:HID_F, :OUT_F].set(
        w2.astype(jnp.float32)).astype(jnp.bfloat16)
    b2p = jnp.zeros((1, OUT_PAD), jnp.float32).at[0, :OUT_F].set(b2.astype(jnp.float32))

    grid = (num_tiles,)

    cost = pl.CostEstimate(
        flops=2 * n_pad * (IN_F * HID_PAD + HID_PAD * OUT_PAD),
        transcendentals=n_pad * (HID_PAD + OUT_PAD),
        bytes_accessed=(n_pad * IN_F * x2d.dtype.itemsize            # x in (native dtype)
                        + n_pad * OUT_PAD * 4                        # out (f32, 16-wide)
                        + (IN_F * HID_PAD + HID_PAD * OUT_PAD) * 2   # weights (bf16)
                        + (HID_PAD + OUT_PAD) * 4),                  # biases (f32)
    )

    out_padded = pl.pallas_call(
        mlp_share_kernel,
        out_shape=jax.ShapeDtypeStruct((n_pad, OUT_PAD), jnp.float32),
        grid_spec=pltpu.PrefetchScalarGridSpec(
            num_scalar_prefetch=0,
            grid=grid,
            in_specs=[
                pl.BlockSpec((tile, IN_F), lambda i: (i, 0)),        # x tile (streamed)
                pl.BlockSpec((IN_F, HID_PAD), lambda i: (0, 0)),     # w1 (resident)
                pl.BlockSpec((1, HID_PAD), lambda i: (0, 0)),        # b1 (resident)
                pl.BlockSpec((HID_PAD, OUT_PAD), lambda i: (0, 0)),  # w2 (resident)
                pl.BlockSpec((1, OUT_PAD), lambda i: (0, 0)),        # b2 (resident)
            ],
            out_specs=pl.BlockSpec((tile, OUT_PAD), lambda i: (i, 0)),
        ),
        compiler_params=pltpu.CompilerParams(
            dimension_semantics=("parallel",),
        ),
        cost_estimate=cost,
    )(x2d, w1p, b1p, w2p, b2p)

    # Narrow (16-wide) output makes this slice cheap (64 B/row read, 40 B/row written).
    return out_padded[:n, :OUT_F]


def _init_params(key):
    """Deterministic init matching nn.Linear shapes (weights stored transposed: (in, out))."""
    k1, k2, k3, k4 = jax.random.split(key, 4)
    bound1 = 1.0 / jnp.sqrt(64.0)    # torch Linear default: U(-1/sqrt(in), 1/sqrt(in))
    bound2 = 1.0 / jnp.sqrt(120.0)
    w1 = jax.random.uniform(k1, (IN_F, HID_F), jnp.float32, -bound1, bound1)
    b1 = jax.random.uniform(k2, (HID_F,), jnp.float32, -bound1, bound1)
    w2 = jax.random.uniform(k3, (HID_F, OUT_F), jnp.float32, -bound2, bound2)
    b2 = jax.random.uniform(k4, (OUT_F,), jnp.float32, -bound2, bound2)
    return w1, b1, w2, b2


if __name__ == "__main__":
    key = jax.random.PRNGKey(0)
    kx, kp = jax.random.split(key)

    # Small image batch consistent with view(-1, 64): (2, 1, 8, 8) -> (2, 64)
    x = jax.random.normal(kx, (2, 1, 8, 8), jnp.float32)
    w1, b1, w2, b2 = _init_params(kp)

    out = mlp_share_forward(x, w1, b1, w2, b2)
    out = jax.block_until_ready(out)

    # Pure-JAX f32 reference (eval-mode dropout == identity).  Tolerance loosened
    # because the kernel's matmul operands and hidden SELU are bf16 (f32 accumulation).
    x2d = x.reshape(-1, IN_F)
    ref = jax.nn.selu(jax.nn.selu(x2d @ w1 + b1) @ w2 + b2)
    assert out.shape == (2, OUT_F)
    err = jnp.max(jnp.abs(out - ref))
    assert jnp.allclose(out, ref, atol=5e-2, rtol=5e-2), f"max abs err {err}"

    print("KERNEL_OK")
</pallas_src>

<mosaic_0001>
module attributes {stable_mosaic.version = 11 : i64} {
  func.func @mlp_share_kernel(%arg0: i32, %arg1: memref<8x64xf32, #tpu.memory_space<vmem>>, %arg2: memref<64x128xbf16, #tpu.memory_space<vmem>>, %arg3: memref<1x128xf32, #tpu.memory_space<vmem>>, %arg4: memref<128x16xbf16, #tpu.memory_space<vmem>>, %arg5: memref<1x16xf32, #tpu.memory_space<vmem>>, %arg6: memref<8x16xf32, #tpu.memory_space<vmem>>) attributes {dimension_semantics = [#tpu.dimension_semantics<parallel>], iteration_bounds = array<i64: 1>, scalar_prefetch = 0 : i64, scratch_operands = 0 : i64, tpu.core_type = #tpu.core_type<tc>, window_params = [{transform_indices = @transform_0, window_bounds = array<i64: 8, 64>}, {pipeline_mode = #tpu.pipeline_mode<synchronous>, transform_indices = @transform_1, window_bounds = array<i64: 64, 128>}, {pipeline_mode = #tpu.pipeline_mode<synchronous>, transform_indices = @transform_2, window_bounds = array<i64: 1, 128>}, {pipeline_mode = #tpu.pipeline_mode<synchronous>, transform_indices = @transform_3, window_bounds = array<i64: 128, 16>}, {pipeline_mode = #tpu.pipeline_mode<synchronous>, transform_indices = @transform_4, window_bounds = array<i64: 1, 16>}, {transform_indices = @transform_5, window_bounds = array<i64: 8, 16>}]} {
    %c0 = arith.constant 0 : index
    %c0_0 = arith.constant 0 : index
    %0 = vector.load %arg1[%c0, %c0_0] : memref<8x64xf32, #tpu.memory_space<vmem>>, vector<8x64xf32>
    %1 = arith.truncf %0 : vector<8x64xf32> to vector<8x64xbf16>
    %c0_1 = arith.constant 0 : index
    %c0_2 = arith.constant 0 : index
    %2 = vector.load %arg2[%c0_1, %c0_2] : memref<64x128xbf16, #tpu.memory_space<vmem>>, vector<64x128xbf16>
    %cst = arith.constant dense<0.000000e+00> : vector<8x128xf32>
    %3 = tpu.matmul %1, %2, %cst {dimension_numbers = #tpu.dot_dimension_numbers<[1], [0], [0], [1], [0, 0, 1, 1], [], []>} : vector<8x64xbf16>, vector<64x128xbf16>, vector<8x128xf32> -> vector<8x128xf32>
    %c0_3 = arith.constant 0 : index
    %c0_4 = arith.constant 0 : index
    %4 = vector.load %arg3[%c0_3, %c0_4] : memref<1x128xf32, #tpu.memory_space<vmem>>, vector<1x128xf32>
    %5 = vector.broadcast %4 : vector<1x128xf32> to vector<8x128xf32>
    %6 = arith.addf %3, %5 : vector<8x128xf32>
    %7 = arith.truncf %6 : vector<8x128xf32> to vector<8x128xbf16>
    %cst_5 = arith.constant 0.000000e+00 : bf16
    %8 = vector.broadcast %cst_5 : bf16 to vector<8x128xbf16>
    %9 = arith.cmpf ogt, %7, %8 : vector<8x128xbf16>
    %10 = math.exp %7 : vector<8x128xbf16>
    %cst_6 = arith.constant 1.000000e+00 : bf16
    %11 = vector.broadcast %cst_6 : bf16 to vector<8x128xbf16>
    %12 = arith.subf %10, %11 : vector<8x128xbf16>
    %cst_7 = arith.constant 1.671880e+00 : bf16
    %13 = vector.broadcast %cst_7 : bf16 to vector<8x128xbf16>
    %14 = arith.mulf %13, %12 : vector<8x128xbf16>
    %15 = arith.select %9, %7, %14 : vector<8x128xi1>, vector<8x128xbf16>
    %cst_8 = arith.constant 1.046880e+00 : bf16
    %16 = vector.broadcast %cst_8 : bf16 to vector<8x128xbf16>
    %17 = arith.mulf %16, %15 : vector<8x128xbf16>
    %c0_9 = arith.constant 0 : index
    %c0_10 = arith.constant 0 : index
    %18 = vector.load %arg4[%c0_9, %c0_10] : memref<128x16xbf16, #tpu.memory_space<vmem>>, vector<128x16xbf16>
    %cst_11 = arith.constant dense<0.000000e+00> : vector<8x16xf32>
    %19 = tpu.matmul %17, %18, %cst_11 {dimension_numbers = #tpu.dot_dimension_numbers<[1], [0], [0], [1], [0, 0, 1, 1], [], []>} : vector<8x128xbf16>, vector<128x16xbf16>, vector<8x16xf32> -> vector<8x16xf32>
    %c0_12 = arith.constant 0 : index
    %c0_13 = arith.constant 0 : index
    %20 = vector.load %arg5[%c0_12, %c0_13] : memref<1x16xf32, #tpu.memory_space<vmem>>, vector<1x16xf32>
    %21 = vector.broadcast %20 : vector<1x16xf32> to vector<8x16xf32>
    %22 = arith.addf %19, %21 : vector<8x16xf32>
    %cst_14 = arith.constant 0.000000e+00 : f32
    %23 = vector.broadcast %cst_14 : f32 to vector<8x16xf32>
    %24 = arith.cmpf ogt, %22, %23 : vector<8x16xf32>
    %25 = math.exp %22 : vector<8x16xf32>
    %cst_15 = arith.constant 1.000000e+00 : f32
    %26 = vector.broadcast %cst_15 : f32 to vector<8x16xf32>
    %27 = arith.subf %25, %26 : vector<8x16xf32>
    %cst_16 = arith.constant 1.67326319 : f32
    %28 = vector.broadcast %cst_16 : f32 to vector<8x16xf32>
    %29 = arith.mulf %28, %27 : vector<8x16xf32>
    %30 = arith.select %24, %22, %29 : vector<8x16xi1>, vector<8x16xf32>
    %cst_17 = arith.constant 1.05070102 : f32
    %31 = vector.broadcast %cst_17 : f32 to vector<8x16xf32>
    %32 = arith.mulf %31, %30 : vector<8x16xf32>
    %c0_18 = arith.constant 0 : index
    %c0_19 = arith.constant 0 : index
    %33 = vector.load %arg6[%c0_18, %c0_19] : memref<8x16xf32, #tpu.memory_space<vmem>>, vector<8x16xf32>
    tpu.vector_store %arg6[%c0_18, %c0_19], %32 {strides = array<i32>} : memref<8x16xf32, #tpu.memory_space<vmem>>, vector<8x16xf32>,
    return
  }
  func.func @transform_0(%arg0: i32) -> (i32, i32) {
    %c0_i32 = arith.constant 0 : i32
    %c0_i32_0 = arith.constant 0 : i32
    return %arg0, %c0_i32 : i32, i32
  }
  func.func @transform_1(%arg0: i32) -> (i32, i32) {
    %c0_i32 = arith.constant 0 : i32
    %c0_i32_0 = arith.constant 0 : i32
    %c0_i32_1 = arith.constant 0 : i32
    return %c0_i32, %c0_i32_0 : i32, i32
  }
  func.func @transform_2(%arg0: i32) -> (i32, i32) {
    %c0_i32 = arith.constant 0 : i32
    %c0_i32_0 = arith.constant 0 : i32
    %c0_i32_1 = arith.constant 0 : i32
    return %c0_i32, %c0_i32_0 : i32, i32
  }
  func.func @transform_3(%arg0: i32) -> (i32, i32) {
    %c0_i32 = arith.constant 0 : i32
    %c0_i32_0 = arith.constant 0 : i32
    %c0_i32_1 = arith.constant 0 : i32
    return %c0_i32, %c0_i32_0 : i32, i32
  }
  func.func @transform_4(%arg0: i32) -> (i32, i32) {
    %c0_i32 = arith.constant 0 : i32
    %c0_i32_0 = arith.constant 0 : i32
    %c0_i32_1 = arith.constant 0 : i32
    return %c0_i32, %c0_i32_0 : i32, i32
  }
  func.func @transform_5(%arg0: i32) -> (i32, i32) {
    %c0_i32 = arith.constant 0 : i32
    %c0_i32_0 = arith.constant 0 : i32
    return %arg0, %c0_i32 : i32, i32
  }
}

</mosaic_0001>

<bundles_post_ra>
// kernel: tpu_custom_call.1
= control target key start
LH: loop header
LB: loop body
LE: loop exit
PB: predicated region body
PF: predicated region fallthrough
CT: control target
= control target key end

     0   :  { %v359_v1 = vmov 0.0   ;;  %vm360_vm0 = vmmov 0   ;;  %s450_s0 = inlined_call_operand.vmem [shape: f32[8,64], index: 0, kind: input, shape index: {}]   ;;  %s451_s1 = inlined_call_operand.vmem [shape: bf16[64,128], index: 1, kind: input, shape index: {}]   ;;  %s452_s2 = inlined_call_operand.vmem [shape: f32[1,128], index: 2, kind: input, shape index: {}]   ;;  %s453_s3 = inlined_call_operand.vmem [shape: bf16[128,16], index: 3, kind: input, shape index: {}]   ;;  %s454_s4 = inlined_call_operand.vmem [shape: f32[1,16], index: 4, kind: input, shape index: {}]   ;;  %s455_s5 = inlined_call_operand.hbm [shape: f32[8,16], index: 5, kind: output, shape index: {}]  }
   0x1   :  { %v319_v0 = vld [vmem:[%s451_s1] sm:$0xff]   ;;  %283 = vmatprep.subr.bf16.mxu0 %v359_v1  ;;  %295 = vmatprep.subr.bf16.mxu1 %v359_v1  ;;  %v320_v2 = vld [vmem:[%s451_s1 + $0x8] sm:$0xff]   ;;  %v321_v4 = vld [vmem:[%s451_s1 + $0x10] sm:$0xff]  }
   0x2   :  { %284 = vmatpush3.bf16.msra.mxu0 %v319_v0  ;;  %291 = vmatprep.mubr.msk.bf16.mxu0 %vm360_vm0, %v359_v1  ;;  %v323_v3 = vld [vmem:[%s453_s3] sm:$0xff]   ;;  %v324_v5 = vld [vmem:[%s453_s3 + $0x8] sm:$0xff]   ;;  %v322_v6 = vld [vmem:[%s451_s1 + $0x18] sm:$0xff]  }
   0x3   :  { %285 = vmatprep.subr.bf16.mxu0 %v359_v1  ;;  %311 = vmatprep.mubr.msk.bf16.mxu1 %vm360_vm0, %v359_v1  ;;  %v25_v7 = vld [vmem:[%s450_s0] sm:$0xff] }
   0x4   :  { %296 = vmatpush3.bf16.msra.mxu1 %v323_v3 }
   0x5   :  { %297 = vmatprep.subr.bf16.mxu1 %v359_v1 }
   0x6   :  { %286 = vmatpush3.bf16.msra.mxu0 %v320_v2 }
   0x7   :  { %287 = vmatprep.subr.bf16.mxu0 %v359_v1 }
   0xa   :  { %288 = vmatpush3.bf16.msra.mxu0 %v321_v4 }
   0xb   :  { %10 = vsyncpa [#allocation3], 0  ;;  %289 = vmatprep.subr.bf16.mxu0 %v359_v1  ;;  %298 = vmatpush3.bf16.msra.mxu1 %v324_v5  ;;  %v26_v8 = vpack.c.bf16 %v25_v7, %v25_v7  ;;  %vm66_vm1 = vcmask 523264   ;;  %v325_v9 = vld [vmem:[%s453_s3 + $0x10] sm:$0xff]   ;;  %v326_v10 = vld [vmem:[%s453_s3 + $0x18] sm:$0xff]   ;;  %vm237_vm4 = vcmask 130048  }
   0xc   :  { %299 = vmatprep.subr.bf16.mxu1 %v359_v1  ;;  %v327_v11 = vld [vmem:[%s453_s3 + $0x20] sm:$0xff]   ;;  %v328_v12 = vld [vmem:[%s453_s3 + $0x28] sm:$0xff]   ;;  %v329_v13 = vld [vmem:[%s453_s3 + $0x30] sm:$0xff]   ;;  %v361_v24 = vmov 1065369472  }
   0xd   :  { %v330_v14 = vld [vmem:[%s453_s3 + $0x38] sm:$0xff]   ;;  %v253_v15 = vld [vmem:[%s452_s2] ss:$0 sm:$0xff]  ;;  %s362_s2 = smov [#allocation2]  }
   0xe   :  { %290 = vmatpush3.bf16.msra.mxu0 %v322_v6  ;;  %v259_v29 = vld [vmem:[%s454_s4] ss:$0 sm:$0xff]  ;;  %s245_s20 = sshll.u32 %s362_s2, 4  ;;  %s246_s20 = int_to_ptr.vmem [resolvable:$true] %s245_s20 }
   0xf   :  { %300 = vmatpush3.bf16.msra.mxu1 %v325_v9  ;;  %s335_s21 = scalar_lea.vmem %s246_s20, 128  ;;  %p340_p1 = scmp.lt.s32.totalorder %s246_s20, %s246_s20 }
  0x10   :  { %301 = vmatprep.subr.bf16.mxu1 %v359_v1  ;;  %p336_p0 = scmp.ne.s32.totalorder %s246_s20, %s335_s21  ;;  %p341_p2 = scmp.lt.s32.totalorder %s335_s21, %s335_s21 }
  0x11   :  { %292 = vmatmul.mubr.msk.bf16.vlgmr.msra.gmra.mrb[0].mxu0 %vm66_vm1, %v26_v8 }
  0x12   :  { %p342_p3 = por %p341_p2, %p340_p1 }
  0x13   :  { %302 = vmatpush3.bf16.msra.mxu1 %v326_v10 }
  0x14   :  { %303 = vmatprep.subr.bf16.mxu1 %v359_v1  ;;  %p343_p4 = pnand %p342_p3, %p336_p0 }
  0x17   :  { %304 = vmatpush3.bf16.msra.mxu1 %v327_v11 }
  0x18   :  { %305 = vmatprep.subr.bf16.mxu1 %v359_v1 }
  0x1b   :  { %306 = vmatpush3.bf16.msra.mxu1 %v328_v12 }
  0x1c   :  { %307 = vmatprep.subr.bf16.mxu1 %v359_v1 }
  0x1f   :  { %308 = vmatpush3.bf16.msra.mxu1 %v329_v13 }
  0x20   :  { %309 = vmatprep.subr.bf16.mxu1 %v359_v1 }
  0x23   :  { %310 = vmatpush3.bf16.msra.mxu1 %v330_v14 }
  0xe4   :  { %v104_v16 = vpop.f32.mrb[0].mxu0 }
  0xe5   :  { %v105_v17 = vadd.f32 %v253_v15, %v104_v16  ;;  %v293_v18 = vpop.f32.mrb[1].mxu0 }
  0xe6   :  { %v107_v19 = vpop.f32.mrb[2].mxu0 }
  0xe7   :  { %v110_v20 = vpack.c.bf16 %v105_v17, %v105_v17  ;;  %v294_v21 = vpop.f32.mrb[3].mxu0 }
  0xe9   :  { %v113_v22 = vmul.bf16 1069105081, %v110_v20  ;;  %vm111_vm2 = vcmp.gt.bf16.partialorder %v110_v20, 0 }
  0xeb   :  { %331 = vpow.bf16 %v113_v22 }
  0xf6   :  { %v332_v23 = vpop.eup %331 }
  0xf7   :  { %v115_v25 = vsub.bf16 %v332_v23, %v361_v24 }
  0xf9   :  { %v116_v26 = vmul.bf16 1071005654, %v115_v25 }
  0xfb   :  { %v117_v27 = vsel %vm111_vm2, %v110_v20, %v116_v26 }
  0xfc   :  { %v118_v28 = vmul.bf16 1065762694, %v117_v27 }
  0xfe   :  { %312 = vmatmul.mubr.bf16.vlgmr.msra.gmra.mrb[0].mxu1 %v118_v28 }
 0x1d1   :  { %v224_v30 = vpop.f32.mrb[0].mxu1 }
 0x1d2   :  { %v225_v31 = vadd.f32 %v259_v29, %v224_v30  ;;  %v313_v32 = vpop.f32.mrb[1].mxu1 }
 0x1d3   :  { %v227_v33 = vpop.f32.mrb[2].mxu1 }
 0x1d4   :  { %v231_v34 = vmul.f32 1.442695, %v225_v31  ;;  %v314_v35 = vpop.f32.mrb[3].mxu1  ;;  %vm230_vm3 = vcmp.gt.f32.partialorder %v225_v31, 0.0 }
 0x1d6   :  { %333 = vpow2.f32 %v231_v34 }
 0x1e0   :  { %v334_v36 = vpop.eup %333 }
 0x1e1   :  { %v268_v37 = vadd.f32 -1.0, %v334_v36 }
 0x1e3   :  { %v234_v38 = vmul.f32 1.6732632, %v268_v37 }
 0x1e5   :  { %v235_v39 = vsel %vm230_vm3, %v225_v31, %v234_v38 }
 0x1e6   :  { %v236_v40 = vmul.f32 1.050701, %v235_v39 }
 0x1e8   :  { %238 = vst.msk [vmem:[#allocation2] sm:$0xff] %vm237_vm4, %v236_v40 }
 0x1e9   :  { %346 = shalt.err (!%p343_p4)
}
 0x1ea   :  { %s347_s23 = scalar_lea.hbm %s455_s5, 128 }
 0x1eb   :  { %p348_p5 = scmp.ne.s32.totalorder %s455_s5, %s347_s23  ;;  %p351_p6 = scmp.lt.u32.totalorder %s347_s23, %s455_s5 }
 0x1ed   :  { %p353_p7 = pnand %p351_p6, %p348_p5 }
 0x1ef   :  { %356 = shalt.err (!%p353_p7)
}
 0x1f0   :  { %248 = dma.vmem_to_hbm [thread:$0]  %s246_s20, 128, %s455_s5, [#allocation3]  }
 0x1f1   :  { %357 = dma.done.wait [#allocation3], 128  }
 0x1f2   :  { %358 = vsyncadd [#allocation3], 4294967168 }
 0x1f3   :  { %252 = vsyncpa [#allocation3], 1 }

</bundles_post_ra>
